<compile_context>
chip_gen: v7x
topology: tpu7x:2x2x1
jax: 0.10.0
libtpu: 0.0.40
codegen_flags: <defaults>
</compile_context>

<pallas_src>
import functools

import jax
import jax.numpy as jnp
from jax.experimental import pallas as pl
from jax.experimental.pallas import tpu as pltpu


_SQRT_HALF = 0.7071067811865476
_TANH_GELU_C = 0.7978845608028654  # sqrt(2/pi)


def _round_up(x, m):
    return (x + m - 1) // m * m


def _round_down(x, m):
    return x // m * m


def _cdiv(a, b):
    return -(-a // b)


def _vmem_config():
    """Per-generation (live-block budget, scoped VMEM limit) in bytes."""
    try:
        cap = pltpu.get_tpu_info().vmem_capacity_bytes
    except Exception:
        cap = 0
    if cap >= 100 * 1024 * 1024:           # v5e / v6e: 128 MiB physical VMEM
        return 24 * 1024 * 1024, 64 * 1024 * 1024
    return 8 * 1024 * 1024, 32 * 1024 * 1024   # v7x (64 MiB) or unknown


# --------------------------------------------------------------------------- #
# 4-D path: ChannelGLU proper
# --------------------------------------------------------------------------- #
def _channel_glu_kernel(x_ref, o_ref, *, approximate_gelu):
    # Block layout: (1, 2, rows, lanes); plane 0 = gate (first C//2 channels),
    # plane 1 = value (second C//2 channels).
    gate = x_ref[0, 0].astype(jnp.float32)
    value = x_ref[0, 1].astype(jnp.float32)

    # Exact sigmoid via tanh identity: one EUP op, no exp / f32 divide.
    sig = 0.5 * (1.0 + jnp.tanh(0.5 * gate))
    o_ref[0, 0] = (sig * value).astype(o_ref.dtype)

    if approximate_gelu:
        # tanh-approximate GELU: single EUP tanh (use on v7x / bf16-v6e where
        # the erf VALU polynomial would flip the kernel VALU-bound).
        g = 0.5 * gate * (1.0 + jnp.tanh(
            _TANH_GELU_C * (gate + 0.044715 * gate * gate * gate)))
    else:
        # Exact erf GELU (torch's default).  On v5e / f32-v6e the VALU polynomial
        # stays hidden under the HBM roofline.
        g = 0.5 * gate * (1.0 + jax.lax.erf(gate * _SQRT_HALF))
    o_ref[0, 1] = g.astype(o_ref.dtype)


def channel_glu(x, *, approximate_gelu=False):
    """Pallas implementation of ChannelGLU.forward (NCHW)."""
    if x.ndim != 4:
        return _gelu_pallas(x)

    N, C, H, W = x.shape
    # TODO(synk): odd channel counts (PyTorch only "works" for C in {1,3} via
    # broadcasting) are not supported by this kernel.
    assert C % 2 == 0 and C >= 2, "ChannelGLU Pallas kernel requires an even channel count"
    split = C // 2
    HW = H * W
    P = split * HW                      # contiguous elements per (batch, plane)
    itemsize = jnp.dtype(x.dtype).itemsize
    block_budget, vmem_limit = _vmem_config()

    kernel = functools.partial(_channel_glu_kernel, approximate_gelu=approximate_gelu)

    if P % 128 == 0:
        # Fast path: flatten each plane into a dense (R, 128) slab.  Identical
        # reshapes on gate / value / output preserve the elementwise pairing, so
        # this is semantically exact, and every block is contiguous in HBM.
        R = P // 128
        if R < 8:
            rt = R                                            # block dim == full dim
        else:
            # live VMEM ~= 2*(in+out) blocks, each 2*rt*128*itemsize bytes
            rt_budget = max(8, _round_down(block_budget // (8 * 128 * itemsize), 8))
            desired_splits = max(1, 4 // N)                   # aim for >= ~4 grid steps
            rt_steps = max(256, _round_up(_cdiv(R, desired_splits), 8))
            rt = max(8, min(_round_down(R, 8), rt_budget, rt_steps))
        grid = (N, _cdiv(R, rt))
        block = (1, 2, rt, 128)
        index_map = lambda n, r: (n, 0, r, 0)
        x_view = x.reshape(N, 2, R, 128)
    else:
        # General path (split*H*W not 128-divisible): natural (split, HW) tiles,
        # ragged last blocks handled by Pallas (no HBM pad/crop).
        if HW < 128:
            lt = HW                                           # == full dim
        else:
            lt = min(_round_down(HW, 128), 2048)              # multiple of 128
        if split < 8:
            st = split                                        # == full dim
        else:
            st_budget = max(8, _round_down(block_budget // (8 * lt * itemsize), 8))
            st = max(8, min(_round_down(split, 8), st_budget))
        grid = (N, _cdiv(split, st), _cdiv(HW, lt))
        block = (1, 2, st, lt)
        index_map = lambda n, i, j: (n, 0, i, j)
        x_view = x.reshape(N, 2, split, HW)

    gate_elems = N * P
    cost = pl.CostEstimate(
        flops=(40 if not approximate_gelu else 16) * gate_elems,   # erf ~ VALU polynomial
        transcendentals=(1 if not approximate_gelu else 2) * gate_elems,
        bytes_accessed=2 * N * C * HW * itemsize,                  # true bytes: read + write
    )

    out = pl.pallas_call(
        kernel,
        out_shape=jax.ShapeDtypeStruct(x_view.shape, x.dtype),
        grid=grid,
        in_specs=[pl.BlockSpec(block, index_map)],
        out_specs=pl.BlockSpec(block, index_map),
        compiler_params=pltpu.CompilerParams(
            dimension_semantics=("parallel",) * len(grid),
            vmem_limit_bytes=vmem_limit,
        ),
        cost_estimate=cost,
    )(x_view)

    return out.reshape(N, C, H, W)


# --------------------------------------------------------------------------- #
# non-4-D path: plain (exact) GELU, tiled and pipelined, no HBM pad/crop
# --------------------------------------------------------------------------- #
def _gelu_kernel(x_ref, o_ref):
    xv = x_ref[...].astype(jnp.float32)
    o_ref[...] = (0.5 * xv * (1.0 + jax.lax.erf(xv * _SQRT_HALF))).astype(o_ref.dtype)


def _gelu_pallas(x):
    block_budget, vmem_limit = _vmem_config()
    itemsize = jnp.dtype(x.dtype).itemsize

    if x.ndim == 0:
        x2 = x.reshape(1, 1)
    elif x.ndim == 1:
        x2 = x.reshape(1, x.shape[0])
    else:
        x2 = x.reshape(-1, x.shape[-1])        # free reshape (contiguous)
    M, L = x2.shape

    # Lane tile: full last dim when small, else a 128-multiple (ragged tail masked).
    bl = L if L <= 2048 else 2048
    # Row tile: multiple of 8 (or == M), sized for the budget, >= ~4 grid steps.
    if M < 8:
        bm = M
    else:
        bm_budget = max(8, _round_down(block_budget // (4 * max(bl, 128) * itemsize), 8))
        bm_steps = max(8, _round_up(_cdiv(M, 4), 8))
        bm = max(8, min(_round_down(M, 8), bm_budget, bm_steps))

    grid = (_cdiv(M, bm), _cdiv(L, bl))
    out = pl.pallas_call(
        _gelu_kernel,
        out_shape=jax.ShapeDtypeStruct((M, L), x.dtype),
        grid=grid,
        in_specs=[pl.BlockSpec((bm, bl), lambda i, j: (i, j))],
        out_specs=pl.BlockSpec((bm, bl), lambda i, j: (i, j)),
        compiler_params=pltpu.CompilerParams(
            dimension_semantics=("parallel", "parallel"),
            vmem_limit_bytes=vmem_limit,
        ),
    )(x2)
    return out.reshape(x.shape)


# --------------------------------------------------------------------------- #
# Pure-JAX reference (for correctness checks)
# --------------------------------------------------------------------------- #
def _gelu_exact_ref(x):
    xf = x.astype(jnp.float32)
    return (0.5 * xf * (1.0 + jax.lax.erf(xf * _SQRT_HALF))).astype(x.dtype)


def _channel_glu_ref(x):
    if x.ndim != 4:
        return _gelu_exact_ref(x)
    split = x.shape[1] // 2
    right = x[:, :split].astype(jnp.float32)
    left = x[:, split:].astype(jnp.float32)
    out = jnp.concatenate(
        [jax.nn.sigmoid(right) * left,
         0.5 * right * (1.0 + jax.lax.erf(right * _SQRT_HALF))],
        axis=1)
    return out.astype(x.dtype)


if __name__ == "__main__":
    key = jax.random.PRNGKey(0)
    ks = jax.random.split(key, 6)

    # primary shape implied by the module spec (dense flat fast path)
    x = jax.random.normal(ks[0], (2, 4, 16, 16), dtype=jnp.float32)
    out = jax.block_until_ready(channel_glu(x))
    assert out.shape == x.shape and out.dtype == x.dtype
    assert jnp.allclose(out, _channel_glu_ref(x), atol=1e-5, rtol=1e-5), "4D mismatch"

    # flat path with a ragged last row-block (R=12, rt=8 -> masked OOB writes)
    x1 = jax.random.normal(ks[1], (1, 16, 12, 16), dtype=jnp.float32)
    out1 = jax.block_until_ready(channel_glu(x1))
    assert jnp.allclose(out1, _channel_glu_ref(x1), atol=1e-5, rtol=1e-5), "ragged mismatch"

    # split*H*W not a multiple of 128 (natural (split, HW) path)
    x2 = jax.random.normal(ks[2], (1, 6, 7, 9), dtype=jnp.float32)
    out2 = jax.block_until_ready(channel_glu(x2))
    assert jnp.allclose(out2, _channel_glu_ref(x2), atol=1e-5, rtol=1e-5), "natural-path mismatch"

    # bf16 activations
    x3 = jax.random.normal(ks[3], (2, 4, 16, 16), dtype=jnp.bfloat16)
    out3 = jax.block_until_ready(channel_glu(x3))
    assert jnp.allclose(out3.astype(jnp.float32),
                        _channel_glu_ref(x3).astype(jnp.float32),
                        atol=2e-2, rtol=2e-2), "bf16 mismatch"

    # opt-in tanh-approximate GELU (EUP path, recommended on v7x / bf16-v6e)
    out4 = jax.block_until_ready(channel_glu(x, approximate_gelu=True))
    assert jnp.allclose(out4, _channel_glu_ref(x), atol=5e-3, rtol=5e-3), "approx-gelu mismatch"

    # non-4D branch (F.gelu path)
    x5 = jax.random.normal(ks[4], (2, 8, 32), dtype=jnp.float32)
    out5 = jax.block_until_ready(channel_glu(x5))
    assert jnp.allclose(out5, _channel_glu_ref(x5), atol=1e-5, rtol=1e-5), "gelu mismatch"

    print("KERNEL_OK")
</pallas_src>

<mosaic_0001>
module attributes {stable_mosaic.version = 11 : i64} {
  func.func @_channel_glu_kernel(%arg0: i32, %arg1: i32, %arg2: memref<1x2x4x128xf32, #tpu.memory_space<vmem>>, %arg3: memref<1x2x4x128xf32, #tpu.memory_space<vmem>>) attributes {dimension_semantics = [#tpu.dimension_semantics<parallel>, #tpu.dimension_semantics<parallel>], iteration_bounds = array<i64: 2, 1>, scalar_prefetch = 0 : i64, scratch_operands = 0 : i64, tpu.core_type = #tpu.core_type<tc>, window_params = [{transform_indices = @transform_0, window_bounds = array<i64: 1, 2, 4, 128>}, {transform_indices = @transform_1, window_bounds = array<i64: 1, 2, 4, 128>}]} {
    %c0 = arith.constant 0 : index
    %c0_0 = arith.constant 0 : index
    %c0_1 = arith.constant 0 : index
    %c0_2 = arith.constant 0 : index
    %0 = vector.load %arg2[%c0, %c0_0, %c0_1, %c0_2] : memref<1x2x4x128xf32, #tpu.memory_space<vmem>>, vector<1x1x4x128xf32>
    %1 = vector.shape_cast %0 : vector<1x1x4x128xf32> to vector<4x128xf32>
    %c0_3 = arith.constant 0 : index
    %c1 = arith.constant 1 : index
    %c0_4 = arith.constant 0 : index
    %c0_5 = arith.constant 0 : index
    %2 = vector.load %arg2[%c0_3, %c1, %c0_4, %c0_5] : memref<1x2x4x128xf32, #tpu.memory_space<vmem>>, vector<1x1x4x128xf32>
    %3 = vector.shape_cast %2 : vector<1x1x4x128xf32> to vector<4x128xf32>
    %cst = arith.constant 5.000000e-01 : f32
    %4 = vector.broadcast %cst : f32 to vector<4x128xf32>
    %5 = arith.mulf %4, %1 : vector<4x128xf32>
    %6 = math.tanh %5 : vector<4x128xf32>
    %cst_6 = arith.constant 1.000000e+00 : f32
    %7 = vector.broadcast %cst_6 : f32 to vector<4x128xf32>
    %8 = arith.addf %7, %6 : vector<4x128xf32>
    %cst_7 = arith.constant 5.000000e-01 : f32
    %9 = vector.broadcast %cst_7 : f32 to vector<4x128xf32>
    %10 = arith.mulf %9, %8 : vector<4x128xf32>
    %11 = arith.mulf %10, %3 : vector<4x128xf32>
    %c0_8 = arith.constant 0 : index
    %c0_9 = arith.constant 0 : index
    %c0_10 = arith.constant 0 : index
    %c0_11 = arith.constant 0 : index
    %12 = vector.load %arg3[%c0_8, %c0_9, %c0_10, %c0_11] : memref<1x2x4x128xf32, #tpu.memory_space<vmem>>, vector<1x1x4x128xf32>
    %13 = vector.shape_cast %12 : vector<1x1x4x128xf32> to vector<4x128xf32>
    %14 = vector.shape_cast %11 : vector<4x128xf32> to vector<1x1x4x128xf32>
    tpu.vector_store %arg3[%c0_8, %c0_9, %c0_10, %c0_11], %14 {strides = array<i32>} : memref<1x2x4x128xf32, #tpu.memory_space<vmem>>, vector<1x1x4x128xf32>,
    %cst_12 = arith.constant 5.000000e-01 : f32
    %15 = vector.broadcast %cst_12 : f32 to vector<4x128xf32>
    %16 = arith.mulf %15, %1 : vector<4x128xf32>
    %cst_13 = arith.constant 0.707106769 : f32
    %17 = vector.broadcast %cst_13 : f32 to vector<4x128xf32>
    %18 = arith.mulf %1, %17 : vector<4x128xf32>
    %19 = math.erf %18 : vector<4x128xf32>
    %cst_14 = arith.constant 1.000000e+00 : f32
    %20 = vector.broadcast %cst_14 : f32 to vector<4x128xf32>
    %21 = arith.addf %20, %19 : vector<4x128xf32>
    %22 = arith.mulf %16, %21 : vector<4x128xf32>
    %c0_15 = arith.constant 0 : index
    %c1_16 = arith.constant 1 : index
    %c0_17 = arith.constant 0 : index
    %c0_18 = arith.constant 0 : index
    %23 = vector.load %arg3[%c0_15, %c1_16, %c0_17, %c0_18] : memref<1x2x4x128xf32, #tpu.memory_space<vmem>>, vector<1x1x4x128xf32>
    %24 = vector.shape_cast %23 : vector<1x1x4x128xf32> to vector<4x128xf32>
    %25 = vector.shape_cast %22 : vector<4x128xf32> to vector<1x1x4x128xf32>
    tpu.vector_store %arg3[%c0_15, %c1_16, %c0_17, %c0_18], %25 {strides = array<i32>} : memref<1x2x4x128xf32, #tpu.memory_space<vmem>>, vector<1x1x4x128xf32>,
    return
  }
  func.func @transform_0(%arg0: i32, %arg1: i32) -> (i32, i32, i32, i32) {
    %c0_i32 = arith.constant 0 : i32
    %c0_i32_0 = arith.constant 0 : i32
    %c0_i32_1 = arith.constant 0 : i32
    return %arg0, %c0_i32, %arg1, %c0_i32_0 : i32, i32, i32, i32
  }
  func.func @transform_1(%arg0: i32, %arg1: i32) -> (i32, i32, i32, i32) {
    %c0_i32 = arith.constant 0 : i32
    %c0_i32_0 = arith.constant 0 : i32
    %c0_i32_1 = arith.constant 0 : i32
    return %arg0, %c0_i32, %arg1, %c0_i32_0 : i32, i32, i32, i32
  }
}

</mosaic_0001>

<bundles_post_ra>
// kernel: tpu_custom_call.1
= control target key start
LH: loop header
LB: loop body
LE: loop exit
PB: predicated region body
PF: predicated region fallthrough
CT: control target
= control target key end

     0   :  { %6 = vsyncpa [#allocation3], 0  ;;  %s661_s0 = inlined_call_operand.hbm [shape: f32[2,2,4,128], index: 0, kind: input, shape index: {}]   ;;  %s662_s1 = inlined_call_operand.hbm [shape: f32[2,2,4,128], index: 1, kind: output, shape index: {}]  }
   0x1   :  { %8 = vsyncpa [#allocation3 + $0x1], 0 }
   0x2   :  { %9 = vsyncpa [#allocation4], 0 }
   0x3   :  { %11 = vsyncpa [#allocation4 + $0x1], 0  ;;  %s486_s6 = smov 0   ;;  %s488_s7 = smov 0  }
   0x4   :  { %s490_s8 = smov 0   ;;  %s492_s9 = smov 0  }
   0x5   :  { %s494_s10 = smov 0   ;;  %s496_s11 = smov 0  }
   0x6 LB: > { %s267_s12 = sadd.s32 4294967295, %s468_s11   ;;  %s268_s13 = sadd.s32 4294967294, %s468_s11   ;;  %s468_s11 = sphi %s496_s11, %s17_s11   ;;  %s464_s10 = sphi %s494_s10, %s677_s10   ;;  %s460_s9 = sphi %s492_s9, %s676_s9   ;;  %s456_s8 = sphi %s490_s8, %s675_s8   ;;  %s452_s7 = sphi %s488_s7, %s674_s7   ;;  %s448_s6 = sphi %s486_s6, %s673_s6  }
   0x7   : > { %s29_s14 = sadd.s32 1, %s464_s10  ;;  %s38_s15 = sadd.s32 1, %s456_s8 }
   0x8   : > { %p31_p0 = scmp.ge.s32.totalorder %s29_s14, 2  ;;  %p45_p1 = scmp.ne.s32.totalorder %s456_s8, %s452_s7 }
   0x9   : > { %p46_p2 = scmp.eq.s32.totalorder %s468_s11, 0  ;;  %p51_p3 = scmp.ne.s32.totalorder %s452_s7, %s448_s6 }
   0xa   : > { %s679_s14 = smov (%p31_p0, %s29_s14), 0  ;;  %p52_p5 = scmp.eq.s32.totalorder %s267_s12, 0 }
   0xb   : > { %p527_p4 = por %p46_p2, %p45_p1  ;;  %s33_s17 = ssub.s32 %s464_s10, %s679_s14 }
   0xc   : > { %p77_p6 = scmp.eq.s32.totalorder %s267_s12, 1  ;;  %p36_p7 = scmp.eq.s32.totalorder %s33_s17, 0 }
   0xd   : > { %p533_p8 = por %p52_p5, %p51_p3  ;;  %p83_p10 = scmp.eq.s32.totalorder %s268_s13, 1 }
   0xe   : > { %p537_p9 = por %p77_p6, %p45_p1  ;;  %p298_p13 = scmp.lt.s32.totalorder %s468_s11, 2 }
   0xf   : > { %s542_s20 = scalar_select %p36_p7, %s456_s8, %s38_s15  }
  0x10   : > { %s666_s19 = scalar_select %p537_p9, 1, 0 }
  0x11   : > { %p544_p11 = por %p83_p10, %p51_p3  ;;  %s103_s22 = sand.u32 1, %s456_s8  }
  0x12   : > { %s271_s23 = sshll.u32 %s103_s22, 3  ;;  %s284_s24 = sshll.u32 %s464_s10, 7 }
  0x13   : > { %s667_s21 = scalar_select %p544_p11, 1, 0 }
  0x14   : > { %s555_s27 = scalar_lea.hbm %s661_s0, %s284_s24  ;;  %s107_s28 = scalar_lea.vmem [#allocation2], %s271_s23 }
  0x15   : > { %s115_s29 = sshll.u32 %s107_s28, 4  ;;  %p561_p0 = pnand %p298_p13, %p527_p4  ;;  %s557_s29 = int_to_ptr.vmem [resolvable:$true] %s115_s29 }
  0x16   : > { %s566_s2 = scalar_lea.sflag [#allocation3], %s103_s22  ;;  %s356_s3 = scalar_lea.hbm %s555_s27, 128 }
  0x17   : > { %p357_p2 = scmp.ne.s32.totalorder %s555_s27, %s356_s3  ;;  %p358_p3 = pneg %p561_p0 }
  0x18   : > { %s361_s12 = scalar_lea.hbm %s661_s0, 256  ;;  %p362_p4 = scmp.lt.u32.totalorder %s555_s27, %s661_s0 }
  0x19   : > { %p359_p5 = pnand %p358_p3, %p357_p2  ;;  %p363_p7 = scmp.lt.u32.totalorder %s361_s12, %s356_s3 }
  0x1a   : > { %p365_p13 = scmp.lt.u32.totalorder %s356_s3, %s555_s27 }
  0x1b   : > { %p360_p6 = pneg %p359_p5  ;;  %p364_p10 = por %p363_p7, %p362_p4 }
  0x1d   : > { %p366_p12 = por %p365_p13, %p364_p10 }
  0x1f   : > { %p367_p1 = pnand %p366_p12, %p360_p6 }
  0x21   : > { %370 = shalt.err (!%p367_p1)
}
  0x22   : > { %s371_s16 = scalar_lea.vmem %s557_s29, 128  ;;  %s470_s17 = smov [#allocation2]  }
  0x23   : > { %p372_p2 = scmp.ne.s32.totalorder %s557_s29, %s371_s16  ;;  %s376_s22 = sshll.u32 %s470_s17, 4  ;;  %s377_s22 = int_to_ptr.vmem [resolvable:$false] %s376_s22 }
  0x24   : > { %s378_s23 = scalar_lea.vmem %s377_s22, 256  ;;  %p379_p9 = scmp.lt.s32.totalorder %s557_s29, %s377_s22 }
  0x25   : > { %p374_p5 = pnand %p372_p2, %p358_p3  ;;  %p380_p4 = scmp.lt.s32.totalorder %s378_s23, %s371_s16 }
  0x27   : > { %p375_p11 = pneg %p374_p5  ;;  %p381_p7 = por %p380_p4, %p379_p9 }
  0x29   : > { %p382_p10 = pnand %p381_p7, %p375_p11 }
  0x2b   : > { %385 = shalt.err (!%p382_p10)
}
  0x2c   : > { %s471_s24 = smov 64   ;;  %s472_s25 = smov 4  }
  0x2d   : > { %293 = dma.hbm_to_vmem [thread:$0]  (!%p561_p0), %s555_s27, 128, %s557_s29, %s566_s2, %s471_s24, %s471_s24, %s472_s25  }
  0x2e   : > { %p123_p12 = scmp.lt.s32.totalorder %s468_s11, 3  ;;  %p669_p1 = scmp.ge.s32.totalorder %s468_s11, 1 }
  0x30   : > { %p124_p3 = pnand %p669_p1, %p123_p12 }
  0x31   : > { %s598_s26 = sand.u32 (!%p124_p3), 1, %s452_s7  }
  0x32   : > { %127 = sbr.rel (%p124_p3) target bundleno = 93 (0x5d), region = 24  ;;  %s275_s28 = sshll.u32 (!%p124_p3), %s598_s26, 3 }
  0x33   : > { %s130_s3 = scalar_lea.sflag (!%p124_p3), [#allocation3], %s598_s26  ;;  %s133_s4 = scalar_lea.vmem (!%p124_p3), [#allocation2], %s275_s28 }
  0x39   : > { %439 = dma.done.wait (%p533_p8), %s130_s3, 128  }
  0x3a   : > { %441 = vsyncadd (%p533_p8), %s130_s3, 4294967168  ;;  %v152_v0 = vld [vmem:[%s133_s4] sm:$0xf]  ;;  %s151_s27 = scalar_lea.vmem [#allocation5], %s275_s28  ;;  %s285_s30 = sshll.u32 %s460_s9, 7 }
  0x3b   : > { %v155_v1 = vmul.f32 0.5, %v152_v0  ;;  %v161_v2 = vmul.f32 0.70710677, %v152_v0  ;;  %s182_s29 = sshll.u32 %s151_s27, 4  ;;  %v277_v6 = vld [vmem:[%s133_s4 + $0x4] sm:$0xf]  ;;  %s612_s5 = scalar_lea.hbm %s662_s1, %s285_s30  ;;  %s607_s29 = int_to_ptr.vmem [resolvable:$true] %s182_s29 }
  0x3c   : > { %s168_s12 = scalar_lea.sflag [#allocation4], %s598_s26  ;;  %s386_s13 = scalar_lea.vmem %s607_s29, 128 }
  0x3d   : > { %352 = vtanh.f32 %v155_v1  ;;  %p387_p8 = scmp.ne.s32.totalorder %s607_s29, %s386_s13  ;;  %p670_p9 = scmp.ne.s32.totalorder %s666_s19, 0 }
  0x3e   : > { %354 = verf.f32 %v161_v2  ;;  %s473_s9 = smov [#allocation5]  }
  0x3f   : > { %p388_p11 = pnand %p387_p8, %p670_p9  ;;  %s390_s15 = sshll.u32 %s473_s9, 4  ;;  %s391_s15 = int_to_ptr.vmem [resolvable:$false] %s390_s15 }
  0x40   : > { %s392_s16 = scalar_lea.vmem %s391_s15, 256  ;;  %p393_p6 = scmp.lt.s32.totalorder %s607_s29, %s391_s15 }
  0x41   : > { %p389_p0 = pneg %p388_p11  ;;  %p394_p13 = scmp.lt.s32.totalorder %s392_s16, %s386_s13 }
  0x43   : > { %p395_p2 = por %p394_p13, %p393_p6 }
  0x45   : > { %p396_p5 = pnand %p395_p2, %p389_p0 }
  0x47   : > { %v353_v3 = vpop.eup %352 }
  0x48   : > { %v355_v4 = vpop.eup %354  ;;  %v157_v5 = vadd.f32 1.0, %v353_v3 }
  0x49   : > { %v163_v7 = vadd.f32 1.0, %v355_v4 }
  0x4a   : > { %v158_v8 = vmul.f32 0.5, %v157_v5 }
  0x4b   : > { %v164_v9 = vmul.f32 %v163_v7, %v155_v1 }
  0x4c   : > { %v159_v10 = vmul.f32 %v277_v6, %v158_v8 }
  0x4d   : > { %278 = vst [vmem:[%s151_s27 + $0x4] sm:$0xf] %v164_v9 }
  0x4e   : > { %160 = vst [vmem:[%s151_s27] sm:$0xf] %v159_v10 }
  0x4f   : > { %399 = shalt.err (!%p396_p5)
}
  0x50   : > { %s400_s17 = scalar_lea.hbm %s612_s5, 128  ;;  %s404_s24 = scalar_lea.hbm %s662_s1, 256 }
  0x51   : > { %p401_p4 = scmp.ne.s32.totalorder %s612_s5, %s400_s17  ;;  %p405_p12 = scmp.lt.u32.totalorder %s612_s5, %s662_s1 }
  0x52   : > { %p406_p1 = scmp.lt.u32.totalorder %s404_s24, %s400_s17  ;;  %p408_p8 = scmp.lt.u32.totalorder %s400_s17, %s612_s5 }
  0x53   : > { %p402_p7 = pnand %p401_p4, %p670_p9 }
  0x54   : > { %p407_p3 = por %p406_p1, %p405_p12 }
  0x55   : > { %p403_p10 = pneg %p402_p7 }
  0x56   : > { %p409_p11 = por %p408_p8, %p407_p3 }
  0x58   : > { %p410_p0 = pnand %p409_p11, %p403_p10 }
  0x5a   : > { %413 = shalt.err (!%p410_p0)
}
  0x5b   : > { %s474_s3 = smov 64   ;;  %s475_s4 = smov 4  }
  0x5c   : > { %288 = dma.vmem_to_hbm [thread:$0]  (%p670_p9), %s607_s29, 128, %s612_s5, %s168_s12, %s474_s3, %s474_s3, %s475_s4  }
  0x5d PF: > { %s197_s27 = sand.u32 1, %s448_s6   ;;  %p671_p6 = scmp.ne.s32.totalorder %s667_s21, 0 }
  0x5e   : > { %p672_p13 = scmp.ge.s32.totalorder %s468_s11, 2  ;;  %s198_s30 = scalar_lea.sflag [#allocation4], %s197_s27 }
  0x60   : > { %p295_p2 = pnand %p672_p13, %p671_p6 }
  0x62   : > { %443 = dma.done.wait (!%p295_p2), %s198_s30, 128  }
  0x63   : > { %445 = vsyncadd (!%p295_p2), %s198_s30, 4294967168  ;;  %s17_s11 = sadd.s32 1, %s468_s11   ;;  %s673_s6 = smov %s452_s7 }
  0x64   : > { %p14_p5 = scmp.ge.s32.totalorder %s17_s11, 4   ;;  %s674_s7 = smov %s456_s8 }
  0x65   : > { %s675_s8 = smov %s542_s20  ;;  %s676_s9 = smov %s464_s10 }
  0x66   : > { %s677_s10 = smov %s679_s14  ;;  %16 = sbr.rel (!%p14_p5) target bundleno = 6 (0x6), region = 71 }
  0x6d   :  { %203 = vsyncpa [#allocation3], 1 }
  0x6e   :  { %205 = vsyncpa [#allocation3 + $0x1], 1 }
  0x6f   :  { %206 = vsyncpa [#allocation4], 1 }
  0x70   :  { %208 = vsyncpa [#allocation4 + $0x1], 1 }

</bundles_post_ra>
